<compile_context>
chip_gen: v7x
topology: tpu7x:2x2x1
jax: 0.10.0
libtpu: 0.0.40
codegen_flags: <defaults>
</compile_context>

<pallas_src>
import math
from functools import partial

import jax
import jax.numpy as jnp
from jax.experimental import pallas as pl
from jax.experimental.pallas import tpu as pltpu

LAYER_NORM_EPS = 1e-12          # BERT default
_INV_SQRT2 = 1.0 / math.sqrt(2.0)
_OUT_PAD = 128                  # lane-dense decoder output width (logits in [:, :2])
_NUM_LABELS = 2


def _token_detection_head_kernel(x_ref, w1_ref, b1_ref, gamma_ref, beta_ref,
                                 w2_ref, b2_ref, out_ref):
    H = x_ref.shape[-1]

    # ---- transform.dense : MXU matmul in native dtype, f32 accumulation ----
    h = jnp.dot(x_ref[...], w1_ref[...], preferred_element_type=jnp.float32)
    h = h + b1_ref[...].astype(jnp.float32)                       # (TM, H)

    # ---- exact (erf) GELU, matching torch.nn.functional.gelu default -------
    h = 0.5 * h * (1.0 + jax.lax.erf(h * _INV_SQRT2))

    # ---- LayerNorm over hidden axis: single-pass row statistics ------------
    inv_h = 1.0 / H
    mean = jnp.sum(h, axis=-1, keepdims=True) * inv_h
    mean_sq = jnp.sum(h * h, axis=-1, keepdims=True) * inv_h
    var = jnp.maximum(mean_sq - mean * mean, 0.0)
    inv_std = jax.lax.rsqrt(var + LAYER_NORM_EPS)
    hn = (h - mean) * inv_std
    hn = hn * gamma_ref[...].astype(jnp.float32) + beta_ref[...].astype(jnp.float32)

    # ---- decoder: (TM, H) @ (H, 128 lane-padded) + bias ---------------------
    w2 = w2_ref[...]
    logits = jnp.dot(hn.astype(w2.dtype), w2, preferred_element_type=jnp.float32)
    logits = logits + b2_ref[...].astype(jnp.float32)
    out_ref[...] = logits.astype(out_ref.dtype)


def prepare_params(params):
    """One-time layout prep: transpose W1, lane-pad W2/b2 to 128 columns."""
    H = params["w1"].shape[1]
    w_dtype = params["w2"].dtype
    w2_pad = jnp.zeros((H, _OUT_PAD), w_dtype).at[:, :_NUM_LABELS].set(params["w2"].T)
    b2_pad = jnp.zeros((1, _OUT_PAD), params["b2"].dtype).at[:, :_NUM_LABELS].set(
        params["b2"].reshape(1, _NUM_LABELS))
    return {
        "w1_t": params["w1"].T,                      # (H, H)  (in, out) layout
        "b1": params["b1"].reshape(1, H),
        "gamma": params["ln_gamma"].reshape(1, H),
        "beta": params["ln_beta"].reshape(1, H),
        "w2_pad": w2_pad,                            # (H, 128)
        "b2_pad": b2_pad,                            # (1, 128)
    }


@partial(jax.jit, static_argnames=("tm",))
def bert_token_detection_head(hidden_states, prepared, *, tm=256):
    """hidden_states: (B, S, H) -> logits: (B, S, 2)."""
    B, S, H = hidden_states.shape
    M = B * S
    x2d = hidden_states.reshape(M, H)

    tm = min(tm, M)
    grid = (pl.cdiv(M, tm),)

    # VMEM budget: resident weights + double-buffered x/out tiles + f32 headroom.
    itemsize_x = x2d.dtype.itemsize
    itemsize_w = prepared["w1_t"].dtype.itemsize
    estimate = (prepared["w1_t"].size * itemsize_w
                + prepared["w2_pad"].size * itemsize_w
                + 2 * tm * H * itemsize_x
                + 2 * tm * _OUT_PAD * itemsize_x
                + 6 * tm * H * 4            # f32 intermediates (h, hn, stats)
                + (4 << 20))
    vmem_limit = int(min(64 * 1024 * 1024, max(32 * 1024 * 1024, estimate)))

    out = pl.pallas_call(
        _token_detection_head_kernel,
        out_shape=jax.ShapeDtypeStruct((M, _OUT_PAD), hidden_states.dtype),
        grid=grid,
        in_specs=[
            pl.BlockSpec((tm, H), lambda i: (i, 0)),         # x tile   (pipelined)
            pl.BlockSpec((H, H), lambda i: (0, 0)),          # W1^T     (resident)
            pl.BlockSpec((1, H), lambda i: (0, 0)),          # b1
            pl.BlockSpec((1, H), lambda i: (0, 0)),          # gamma
            pl.BlockSpec((1, H), lambda i: (0, 0)),          # beta
            pl.BlockSpec((H, _OUT_PAD), lambda i: (0, 0)),   # W2 (lane-padded)
            pl.BlockSpec((1, _OUT_PAD), lambda i: (0, 0)),   # b2 (lane-padded)
        ],
        out_specs=pl.BlockSpec((tm, _OUT_PAD), lambda i: (i, 0)),
        compiler_params=pltpu.CompilerParams(
            dimension_semantics=("parallel",),
            vmem_limit_bytes=vmem_limit,
        ),
    )(x2d, prepared["w1_t"], prepared["b1"], prepared["gamma"],
      prepared["beta"], prepared["w2_pad"], prepared["b2_pad"])

    return out[:, :_NUM_LABELS].reshape(B, S, _NUM_LABELS)


def init_params(key, hidden_size):
    """Deterministic synthetic init matching the module's parameter shapes."""
    k1, k2, k3 = jax.random.split(key, 3)
    scale = 0.02
    return {
        # BertPredictionHeadTransform.dense: Linear(H, H)
        "w1": scale * jax.random.normal(k1, (hidden_size, hidden_size), jnp.float32),
        "b1": scale * jax.random.normal(k2, (hidden_size,), jnp.float32),
        # BertPredictionHeadTransform.LayerNorm
        "ln_gamma": jnp.ones((hidden_size,), jnp.float32),
        "ln_beta": jnp.zeros((hidden_size,), jnp.float32),
        # decoder: Linear(H, 2, bias=False) with self.bias = zeros(2) attached
        "w2": scale * jax.random.normal(k3, (2, hidden_size), jnp.float32),
        "b2": jnp.zeros((2,), jnp.float32),
    }


def _reference(hidden_states, params):
    """Pure-JAX reference for a correctness check (PyTorch-layout weights)."""
    x = hidden_states.astype(jnp.float32)
    h = x @ params["w1"].T + params["b1"]
    h = 0.5 * h * (1.0 + jax.lax.erf(h / math.sqrt(2.0)))
    mean = jnp.mean(h, axis=-1, keepdims=True)
    var = jnp.mean((h - mean) ** 2, axis=-1, keepdims=True)
    h = (h - mean) * jax.lax.rsqrt(var + LAYER_NORM_EPS)
    h = h * params["ln_gamma"] + params["ln_beta"]
    return h @ params["w2"].T + params["b2"]


if __name__ == "__main__":
    key = jax.random.PRNGKey(0)
    batch, seq, hidden = 2, 8, 32

    k_x, k_p = jax.random.split(key)
    hidden_states = jax.random.normal(k_x, (batch, seq, hidden), jnp.float32)
    params = init_params(k_p, hidden)
    prepared = prepare_params(params)

    # tm=8 gives a 2-step grid even at this tiny shape, exercising the pipeline.
    out = bert_token_detection_head(hidden_states, prepared, tm=8)
    out = jax.block_until_ready(out)

    ref = _reference(hidden_states, params)
    assert out.shape == (batch, seq, 2)
    assert jnp.allclose(out, ref, atol=1e-4, rtol=1e-4), "mismatch vs reference"

    print("KERNEL_OK")
</pallas_src>

<mosaic_0001>
module attributes {stable_mosaic.version = 11 : i64} {
  func.func @_token_detection_head_kernel(%arg0: i32, %arg1: memref<8x32xf32, #tpu.memory_space<vmem>>, %arg2: memref<32x32xf32, #tpu.memory_space<vmem>>, %arg3: memref<1x32xf32, #tpu.memory_space<vmem>>, %arg4: memref<1x32xf32, #tpu.memory_space<vmem>>, %arg5: memref<1x32xf32, #tpu.memory_space<vmem>>, %arg6: memref<32x128xf32, #tpu.memory_space<vmem>>, %arg7: memref<1x128xf32, #tpu.memory_space<vmem>>, %arg8: memref<8x128xf32, #tpu.memory_space<vmem>>) attributes {dimension_semantics = [#tpu.dimension_semantics<parallel>], iteration_bounds = array<i64: 2>, scalar_prefetch = 0 : i64, scratch_operands = 0 : i64, tpu.core_type = #tpu.core_type<tc>, window_params = [{transform_indices = @transform_0, window_bounds = array<i64: 8, 32>}, {pipeline_mode = #tpu.pipeline_mode<synchronous>, transform_indices = @transform_1, window_bounds = array<i64: 32, 32>}, {pipeline_mode = #tpu.pipeline_mode<synchronous>, transform_indices = @transform_2, window_bounds = array<i64: 1, 32>}, {pipeline_mode = #tpu.pipeline_mode<synchronous>, transform_indices = @transform_3, window_bounds = array<i64: 1, 32>}, {pipeline_mode = #tpu.pipeline_mode<synchronous>, transform_indices = @transform_4, window_bounds = array<i64: 1, 32>}, {pipeline_mode = #tpu.pipeline_mode<synchronous>, transform_indices = @transform_5, window_bounds = array<i64: 32, 128>}, {pipeline_mode = #tpu.pipeline_mode<synchronous>, transform_indices = @transform_6, window_bounds = array<i64: 1, 128>}, {transform_indices = @transform_7, window_bounds = array<i64: 8, 128>}]} {
    %c0 = arith.constant 0 : index
    %c0_0 = arith.constant 0 : index
    %0 = vector.load %arg1[%c0, %c0_0] : memref<8x32xf32, #tpu.memory_space<vmem>>, vector<8x32xf32>
    %c0_1 = arith.constant 0 : index
    %c0_2 = arith.constant 0 : index
    %1 = vector.load %arg2[%c0_1, %c0_2] : memref<32x32xf32, #tpu.memory_space<vmem>>, vector<32x32xf32>
    %cst = arith.constant dense<0.000000e+00> : vector<8x32xf32>
    %2 = tpu.matmul %0, %1, %cst {dimension_numbers = #tpu.dot_dimension_numbers<[1], [0], [0], [1], [0, 0, 1, 1], [], []>} : vector<8x32xf32>, vector<32x32xf32>, vector<8x32xf32> -> vector<8x32xf32>
    %c0_3 = arith.constant 0 : index
    %c0_4 = arith.constant 0 : index
    %3 = vector.load %arg3[%c0_3, %c0_4] : memref<1x32xf32, #tpu.memory_space<vmem>>, vector<1x32xf32>
    %4 = vector.broadcast %3 : vector<1x32xf32> to vector<8x32xf32>
    %5 = arith.addf %2, %4 : vector<8x32xf32>
    %cst_5 = arith.constant 5.000000e-01 : f32
    %6 = vector.broadcast %cst_5 : f32 to vector<8x32xf32>
    %7 = arith.mulf %6, %5 : vector<8x32xf32>
    %cst_6 = arith.constant 0.707106769 : f32
    %8 = vector.broadcast %cst_6 : f32 to vector<8x32xf32>
    %9 = arith.mulf %5, %8 : vector<8x32xf32>
    %10 = math.erf %9 : vector<8x32xf32>
    %cst_7 = arith.constant 1.000000e+00 : f32
    %11 = vector.broadcast %cst_7 : f32 to vector<8x32xf32>
    %12 = arith.addf %11, %10 : vector<8x32xf32>
    %13 = arith.mulf %7, %12 : vector<8x32xf32>
    %cst_8 = arith.constant dense<0.000000e+00> : vector<8xf32>
    %14 = vector.multi_reduction <add>, %13, %cst_8 [1] : vector<8x32xf32> to vector<8xf32>
    %15 = vector.shape_cast %14 : vector<8xf32> to vector<8x1xf32>
    %cst_9 = arith.constant 3.125000e-02 : f32
    %16 = vector.broadcast %cst_9 : f32 to vector<8x1xf32>
    %17 = arith.mulf %15, %16 : vector<8x1xf32>
    %18 = arith.mulf %13, %13 : vector<8x32xf32>
    %cst_10 = arith.constant dense<0.000000e+00> : vector<8xf32>
    %19 = vector.multi_reduction <add>, %18, %cst_10 [1] : vector<8x32xf32> to vector<8xf32>
    %20 = vector.shape_cast %19 : vector<8xf32> to vector<8x1xf32>
    %cst_11 = arith.constant 3.125000e-02 : f32
    %21 = vector.broadcast %cst_11 : f32 to vector<8x1xf32>
    %22 = arith.mulf %20, %21 : vector<8x1xf32>
    %23 = arith.mulf %17, %17 : vector<8x1xf32>
    %24 = arith.subf %22, %23 : vector<8x1xf32>
    %cst_12 = arith.constant 0.000000e+00 : f32
    %25 = vector.broadcast %cst_12 : f32 to vector<8x1xf32>
    %26 = arith.maximumf %24, %25 : vector<8x1xf32>
    %cst_13 = arith.constant 9.99999996E-13 : f32
    %27 = vector.broadcast %cst_13 : f32 to vector<8x1xf32>
    %28 = arith.addf %26, %27 : vector<8x1xf32>
    %29 = math.rsqrt %28 : vector<8x1xf32>
    %30 = vector.broadcast %17 : vector<8x1xf32> to vector<8x32xf32>
    %31 = arith.subf %13, %30 : vector<8x32xf32>
    %32 = vector.broadcast %29 : vector<8x1xf32> to vector<8x32xf32>
    %33 = arith.mulf %31, %32 : vector<8x32xf32>
    %c0_14 = arith.constant 0 : index
    %c0_15 = arith.constant 0 : index
    %34 = vector.load %arg4[%c0_14, %c0_15] : memref<1x32xf32, #tpu.memory_space<vmem>>, vector<1x32xf32>
    %35 = vector.broadcast %34 : vector<1x32xf32> to vector<8x32xf32>
    %36 = arith.mulf %33, %35 : vector<8x32xf32>
    %c0_16 = arith.constant 0 : index
    %c0_17 = arith.constant 0 : index
    %37 = vector.load %arg5[%c0_16, %c0_17] : memref<1x32xf32, #tpu.memory_space<vmem>>, vector<1x32xf32>
    %38 = vector.broadcast %37 : vector<1x32xf32> to vector<8x32xf32>
    %39 = arith.addf %36, %38 : vector<8x32xf32>
    %c0_18 = arith.constant 0 : index
    %c0_19 = arith.constant 0 : index
    %40 = vector.load %arg6[%c0_18, %c0_19] : memref<32x128xf32, #tpu.memory_space<vmem>>, vector<32x128xf32>
    %cst_20 = arith.constant dense<0.000000e+00> : vector<8x128xf32>
    %41 = tpu.matmul %39, %40, %cst_20 {dimension_numbers = #tpu.dot_dimension_numbers<[1], [0], [0], [1], [0, 0, 1, 1], [], []>} : vector<8x32xf32>, vector<32x128xf32>, vector<8x128xf32> -> vector<8x128xf32>
    %c0_21 = arith.constant 0 : index
    %c0_22 = arith.constant 0 : index
    %42 = vector.load %arg7[%c0_21, %c0_22] : memref<1x128xf32, #tpu.memory_space<vmem>>, vector<1x128xf32>
    %43 = vector.broadcast %42 : vector<1x128xf32> to vector<8x128xf32>
    %44 = arith.addf %41, %43 : vector<8x128xf32>
    %c0_23 = arith.constant 0 : index
    %c0_24 = arith.constant 0 : index
    %45 = vector.load %arg8[%c0_23, %c0_24] : memref<8x128xf32, #tpu.memory_space<vmem>>, vector<8x128xf32>
    tpu.vector_store %arg8[%c0_23, %c0_24], %44 {strides = array<i32>} : memref<8x128xf32, #tpu.memory_space<vmem>>, vector<8x128xf32>,
    return
  }
  func.func @transform_0(%arg0: i32) -> (i32, i32) {
    %c0_i32 = arith.constant 0 : i32
    %c0_i32_0 = arith.constant 0 : i32
    return %arg0, %c0_i32 : i32, i32
  }
  func.func @transform_1(%arg0: i32) -> (i32, i32) {
    %c0_i32 = arith.constant 0 : i32
    %c0_i32_0 = arith.constant 0 : i32
    %c0_i32_1 = arith.constant 0 : i32
    return %c0_i32, %c0_i32_0 : i32, i32
  }
  func.func @transform_2(%arg0: i32) -> (i32, i32) {
    %c0_i32 = arith.constant 0 : i32
    %c0_i32_0 = arith.constant 0 : i32
    %c0_i32_1 = arith.constant 0 : i32
    return %c0_i32, %c0_i32_0 : i32, i32
  }
  func.func @transform_3(%arg0: i32) -> (i32, i32) {
    %c0_i32 = arith.constant 0 : i32
    %c0_i32_0 = arith.constant 0 : i32
    %c0_i32_1 = arith.constant 0 : i32
    return %c0_i32, %c0_i32_0 : i32, i32
  }
  func.func @transform_4(%arg0: i32) -> (i32, i32) {
    %c0_i32 = arith.constant 0 : i32
    %c0_i32_0 = arith.constant 0 : i32
    %c0_i32_1 = arith.constant 0 : i32
    return %c0_i32, %c0_i32_0 : i32, i32
  }
  func.func @transform_5(%arg0: i32) -> (i32, i32) {
    %c0_i32 = arith.constant 0 : i32
    %c0_i32_0 = arith.constant 0 : i32
    %c0_i32_1 = arith.constant 0 : i32
    return %c0_i32, %c0_i32_0 : i32, i32
  }
  func.func @transform_6(%arg0: i32) -> (i32, i32) {
    %c0_i32 = arith.constant 0 : i32
    %c0_i32_0 = arith.constant 0 : i32
    %c0_i32_1 = arith.constant 0 : i32
    return %c0_i32, %c0_i32_0 : i32, i32
  }
  func.func @transform_7(%arg0: i32) -> (i32, i32) {
    %c0_i32 = arith.constant 0 : i32
    %c0_i32_0 = arith.constant 0 : i32
    return %arg0, %c0_i32 : i32, i32
  }
}

</mosaic_0001>

<bundles_post_ra>
// kernel: bert_token_detection_head.1
= control target key start
LH: loop header
LB: loop body
LE: loop exit
PB: predicated region body
PF: predicated region fallthrough
CT: control target
= control target key end

     0   :  { %12 = vsyncpa [#allocation3], 0  ;;  %s1110_s0 = inlined_call_operand.hbm [shape: f32[16,32], index: 0, kind: input, shape index: {}]   ;;  %s1111_s1 = inlined_call_operand.hbm [shape: f32[32,32], index: 1, kind: input, shape index: {}]   ;;  %s1112_s2 = inlined_call_operand.vmem [shape: f32[1,32], index: 2, kind: input, shape index: {}]   ;;  %s1113_s3 = inlined_call_operand.vmem [shape: f32[1,32], index: 3, kind: input, shape index: {}]   ;;  %s1114_s4 = inlined_call_operand.vmem [shape: f32[1,32], index: 4, kind: input, shape index: {}]   ;;  %s1115_s5 = inlined_call_operand.hbm [shape: f32[32,128], index: 5, kind: input, shape index: {}]   ;;  %s1116_s6 = inlined_call_operand.vmem [shape: f32[1,128], index: 6, kind: input, shape index: {}]   ;;  %s1117_s7 = inlined_call_operand.vmem [shape: f32[16,128], index: 7, kind: output, shape index: {}]  }
   0x1   :  { %14 = vsyncpa [#allocation3 + $0x1], 0 }
   0x2   :  { %15 = vsyncpa [#allocation5], 0  ;;  %s922_s24 = smov 0   ;;  %s924_s25 = smov 0  }
   0x3   :  { %s926_s26 = smov 0   ;;  %s928_s27 = smov 0  }
   0x4 LB: > { %s941_s28 = sadd.s32 4294967295, %s872_s27   ;;  %p41_p0 = scmp.ne.s32.totalorder %s864_s25, %s860_s24  ;;  %s872_s27 = sphi %s928_s27, %s1132_s27   ;;  %s868_s26 = sphi %s926_s26, %s1131_s26   ;;  %s864_s25 = sphi %s924_s25, %s1130_s25   ;;  %s860_s24 = sphi %s922_s24, %s1129_s24  }
   0x5   : > { %p1118_p1 = scmp.eq.s32.totalorder %s941_s28, 0  ;;  %p616_p2 = scmp.ge.s32.totalorder %s872_s27, 1 }
   0x6   : > { %p204_p3 = scmp.lt.s32.totalorder %s872_s27, 3  ;;  %s874_s8 = smov [#allocation4]  }
   0x7   : > { %p949_p4 = por %p1118_p1, %p41_p0  ;;  %s216_s9 = sshll.u32 %s874_s8, 4  ;;  %s217_s9 = int_to_ptr.vmem [resolvable:$true] %s216_s9 }
   0x8   : > { %p953_p5 = pnand %p616_p2, %p204_p3  ;;  %s875_s11 = smov [#allocation6]  }
   0x9   : > { %s1121_s29 = scalar_select %p949_p4, 1, 0 }
   0xa   : > { %s1122_s30 = scalar_select %p953_p5, 1, 0 }
   0xb   : > { %p689_p6 = pneg %p953_p5  ;;  %s238_s12 = sshll.u32 %s875_s11, 4  ;;  %s965_s12 = int_to_ptr.vmem [resolvable:$true] %s238_s12 }
   0xc   : > { %s748_s15 = scalar_lea.hbm %s1111_s1, 512 }
   0xd   : > { %p961_p7 = pnand %p689_p6, %p1118_p1  ;;  %p749_p8 = scmp.ne.s32.totalorder %s1111_s1, %s748_s15 }
   0xe   : > { %p755_p12 = scmp.lt.u32.totalorder %s748_s15, %s1111_s1 }
   0xf   : > { %p750_p9 = pneg %p961_p7 }
  0x11   : > { %p751_p10 = pnand %p750_p9, %p749_p8 }
  0x13   : > { %p752_p11 = pneg %p751_p10 }
  0x15   : > { %p757_p13 = pnand %p755_p12, %p752_p11 }
  0x17   : > { %760 = shalt.err (!%p757_p13)
}
  0x18   : > { %s761_s20 = scalar_lea.vmem %s217_s9, 512  ;;  %p769_p6 = scmp.lt.s32.totalorder %s217_s9, %s217_s9 }
  0x19   : > { %p762_p0 = scmp.ne.s32.totalorder %s217_s9, %s761_s20  ;;  %p770_p1 = scmp.lt.s32.totalorder %s761_s20, %s761_s20 }
  0x1b   : > { %p764_p2 = pnand %p762_p0, %p750_p9  ;;  %p771_p4 = por %p770_p1, %p769_p6 }
  0x1d   : > { %p765_p3 = pneg %p764_p2 }
  0x1f   : > { %p772_p5 = pnand %p771_p4, %p765_p3 }
  0x21   : > { %775 = shalt.err (!%p772_p5)
}
  0x22   : > { %s876_s21 = smov 128   ;;  %s877_s22 = smov 8  }
  0x23   : > { %692 = dma.hbm_to_vmem [thread:$0]  (!%p961_p7), %s1111_s1, 512, %s217_s9, [#allocation5], %s876_s21, %s876_s21, %s877_s22  }
  0x24   : > { %s776_s13 = scalar_lea.hbm %s1115_s5, 512 }
  0x25   : > { %p777_p8 = scmp.ne.s32.totalorder %s1115_s5, %s776_s13  ;;  %p783_p5 = scmp.lt.u32.totalorder %s776_s13, %s1115_s5 }
  0x27   : > { %p779_p1 = pnand %p777_p8, %p750_p9 }
  0x29   : > { %p780_p4 = pneg %p779_p1 }
  0x2b   : > { %p785_p10 = pnand %p783_p5, %p780_p4 }
  0x2d   : > { %788 = shalt.err (!%p785_p10)
}
  0x2e   : > { %s789_s9 = scalar_lea.vmem %s965_s12, 512  ;;  %p797_p0 = scmp.lt.s32.totalorder %s965_s12, %s965_s12 }
  0x2f   : > { %p790_p11 = scmp.ne.s32.totalorder %s965_s12, %s789_s9  ;;  %p798_p2 = scmp.lt.s32.totalorder %s789_s9, %s789_s9 }
  0x31   : > { %p792_p12 = pnand %p790_p11, %p750_p9  ;;  %p799_p3 = por %p798_p2, %p797_p0 }
  0x33   : > { %p793_p13 = pneg %p792_p12 }
  0x35   : > { %p800_p6 = pnand %p799_p3, %p793_p13 }
  0x37   : > { %803 = shalt.err (!%p800_p6)
}
  0x38   : > { %695 = dma.hbm_to_vmem [thread:$0]  (!%p961_p7), %s1115_s5, 512, %s965_s12, [#allocation5], %s876_s21, %s876_s21, %s877_s22  }
  0x39   : > { %s1015_s20 = sadd.s32 1, %s872_s27   ;;  %s28_s23 = sadd.s32 1, %s868_s26 }
  0x3a   : > { %s25_s10 = ssub.s32 %s872_s27, %s1015_s20  ;;  %p35_p9 = scmp.ne.s32.totalorder %s868_s26, %s864_s25 }
  0x3b   : > { %p26_p8 = scmp.eq.s32.totalorder %s25_s10, 0  ;;  %p36_p1 = scmp.eq.s32.totalorder %s872_s27, 0 }
  0x3c   : > { %p702_p4 = scmp.lt.s32.totalorder %s872_s27, 2  ;;  %s255_s24 = sand.u32 1, %s868_s26  }
  0x3d   : > { %s1026_s8 = scalar_select %p26_p8, %s868_s26, %s28_s23  }
  0x3e   : > { %p37_p5 = por %p36_p1, %p35_p9  ;;  %s620_s11 = sshll.u32 %s255_s24, 3 }
  0x3f   : > { %s621_s13 = sshll.u32 %s872_s27, 7  ;;  %s259_s12 = scalar_lea.vmem [#allocation2], %s620_s11 }
  0x40   : > { %s1032_s16 = scalar_lea.hbm %s1110_s0, %s621_s13  ;;  %s266_s21 = sshll.u32 %s259_s12, 4  ;;  %s1038_s21 = int_to_ptr.vmem [resolvable:$true] %s266_s21 }
  0x41   : > { %p1034_p7 = pnand %p702_p4, %p37_p5  ;;  %s256_s27 = scalar_lea.sflag [#allocation3], %s255_s24 }
  0x42   : > { %s804_s17 = scalar_lea.hbm %s1032_s16, 128  ;;  %s809_s19 = scalar_lea.hbm %s1110_s0, 256 }
  0x43   : > { %p805_p10 = scmp.ne.s32.totalorder %s1032_s16, %s804_s17  ;;  %p806_p11 = pneg %p1034_p7 }
  0x44   : > { %p810_p0 = scmp.lt.u32.totalorder %s1032_s16, %s1110_s0  ;;  %p811_p2 = scmp.lt.u32.totalorder %s809_s19, %s804_s17 }
  0x45   : > { %p807_p12 = pnand %p806_p11, %p805_p10  ;;  %p813_p6 = scmp.lt.u32.totalorder %s804_s17, %s1032_s16 }
  0x46   : > { %p812_p3 = por %p811_p2, %p810_p0 }
  0x47   : > { %p808_p13 = pneg %p807_p12 }
  0x48   : > { %p814_p9 = por %p813_p6, %p812_p3 }
  0x4a   : > { %p815_p8 = pnand %p814_p9, %p808_p13 }
  0x4c   : > { %818 = shalt.err (!%p815_p8)
}
  0x4d   : > { %s819_s24 = scalar_lea.vmem %s1038_s21, 128  ;;  %s878_s11 = smov [#allocation2]  }
  0x4e   : > { %p820_p1 = scmp.ne.s32.totalorder %s1038_s21, %s819_s24  ;;  %s824_s13 = sshll.u32 %s878_s11, 4  ;;  %s825_s13 = int_to_ptr.vmem [resolvable:$false] %s824_s13 }
  0x4f   : > { %s826_s14 = scalar_lea.vmem %s825_s13, 256  ;;  %p827_p10 = scmp.lt.s32.totalorder %s1038_s21, %s825_s13 }
  0x50   : > { %p822_p4 = pnand %p820_p1, %p806_p11  ;;  %p828_p12 = scmp.lt.s32.totalorder %s826_s14, %s819_s24 }
  0x52   : > { %p823_p5 = pneg %p822_p4  ;;  %p829_p0 = por %p828_p12, %p827_p10 }
  0x54   : > { %p830_p2 = pnand %p829_p0, %p823_p5 }
  0x56   : > { %833 = shalt.err (!%p830_p2)
}
  0x57   : > { %699 = dma.hbm_to_vmem [thread:$0]  (!%p1034_p7), %s1032_s16, 128, %s1038_s21, %s256_s27  }
  0x58   : > { %p1125_p13 = scmp.ne.s32.totalorder %s1122_s30, 0 }
  0x59   : > { %s277_s15 = sand.u32 (!%p1125_p13), 1, %s864_s25   ;;  %p1126_p11 = scmp.ne.s32.totalorder (!%p1125_p13), %s1121_s29, 0 }
  0x5a   : > { %275 = sbr.rel (%p1125_p13) target bundleno = 729 (0x2d9), region = 48  ;;  %s623_s12 = sshll.u32 (!%p1125_p13), %s277_s15, 3 }
  0x5b   : > { %s278_s17 = scalar_lea.sflag (!%p1125_p13), [#allocation3], %s277_s15  ;;  %s281_s9 = scalar_lea.vmem (!%p1125_p13), [#allocation2], %s623_s12 }
  0x61   : > { %851 = dma.done.wait (%p1126_p11), %s278_s17, 128  }
  0x62   : > { %853 = vsyncadd (%p1126_p11), %s278_s17, 4294967168  ;;  %p1127_p3 = scmp.eq.s32.totalorder %s941_s28, 0 }
  0x64   : > { %855 = dma.done.wait (%p1127_p3), [#allocation5], 1024   ;;  %p1128_p6 = pmov %p1127_p3 }
  0x65   : > { %v879_v0 = vmov 0.0|0.0   ;;  %vm880_vm0 = vmmov 0   ;;  %v881_v1 = vmov 0.0   ;;  %v324_v2 = vld [vmem:[#allocation4] sm:$0xff]  ;;  %v325_v3 = vld [vmem:[#allocation4 + $0x8] sm:$0xff]  ;;  %v326_v4 = vld [vmem:[#allocation4 + $0x10] sm:$0xff] }
  0x66   : > { %857 = vsyncadd (%p1128_p6), [#allocation5], 4294966272  ;;  %667 = vmatprep.subr.bf16.mxu0 %v879_v0  ;;  %653 = vmatprep.mubr.msk.f32.mxu0 %vm880_vm0, %v881_v1  ;;  %v668_v5 = vpack.c.bf16 %v325_v3, %v324_v2  ;;  %v327_v6 = vld [vmem:[#allocation4 + $0x18] sm:$0xff]  ;;  %vm335_vm1 = vcmask 261120   ;;  %v627_v9 = vld [vmem:[%s1112_s2] ss:$0 sm:$0xff] }
  0x67   : > { %673 = vmatprep.subr.bf16.mxu1 %v879_v0  ;;  %664 = vmatprep.mubr.msk.f32.mxu1 %vm880_vm0, %v881_v1  ;;  %v671_v7 = vpack.c.bf16 %v327_v6, %v326_v4  ;;  %v323_v8 = vld [vmem:[%s281_s9] sm:$0xff]  ;;  %v446_v21 = vld [vmem:[#allocation6] sm:$0xff]  ;;  %v447_v22 = vld [vmem:[#allocation6 + $0x8] sm:$0xff]  ;;  %p319_p7 = scmp.lt.s32.totalorder %s941_s28, 1 }
  0x68   : > { %669 = vmatpush3.bf16.msra.mxu0 %v668_v5  ;;  %v448_v23 = vld [vmem:[#allocation6 + $0x10] sm:$0xff]  ;;  %v674_v24 = vpack.c.bf16 %v447_v22, %v446_v21  ;;  %v449_v25 = vld [vmem:[#allocation6 + $0x18] sm:$0xff] }
  0x69   : > { %670 = vmatprep.subr.bf16.mxu0 %v879_v0  ;;  %v677_v26 = vpack.c.bf16 %v449_v25, %v448_v23  ;;  %v629_v37 = vld [vmem:[%s1113_s3] ss:$0 sm:$0xff]  ;;  %s1134_s28 = smov (!%p319_p7, %s941_s28), 1 }
  0x6a   : > { %675 = vmatpush3.bf16.msra.mxu1 %v674_v24  ;;  %v630_v39 = vld [vmem:[%s1114_s4] ss:$0 sm:$0xff]  ;;  %s626_s18 = sshll.u32 %s1134_s28, 3 }
  0x6b   : > { %676 = vmatprep.subr.bf16.mxu1 %v879_v0  ;;  %v631_v42 = vld [vmem:[%s1116_s6] ss:$0 sm:$0xff]  ;;  %s322_s11 = scalar_lea.vmem %s1117_s7, %s626_s18 }
  0x6c   : > { %672 = vmatpush3.bf16.msra.mxu0 %v671_v7 }
  0x6e   : > { %678 = vmatpush3.bf16.msra.mxu1 %v677_v26 }
  0x6f   : > { %654 = vmatmul.mubr.msk.f32.vlgmr.msra.gmra.mrb[0].mxu0 %vm335_vm1, %v323_v8 }
 0x142   : > { %v405_v10 = vpop.f32.mrb[0].mxu0 }
 0x143   : > { %v406_v11 = vadd.f32 %v627_v9, %v405_v10  ;;  %v655_v12 = vpop.f32.mrb[1].mxu0 }
 0x145   : > { %v410_v13 = vmul.f32 0.70710677, %v406_v11  ;;  %v409_v15 = vmul.f32 0.5, %v406_v11 }
 0x147   : > { %744 = verf.f32 %v410_v13 }
 0x151   : > { %v745_v14 = vpop.eup %744 }
 0x152   : > { %v412_v16 = vadd.f32 1.0, %v745_v14 }
 0x154   : > { %v413_v17 = vmul.f32 %v412_v16, %v409_v15 }
 0x156   : > { %v414_v18 = vsel %vm335_vm1, %v413_v17, 0.0  ;;  %v418_v19 = vmul.f32 %v413_v17, %v413_v17 }
 0x157   : > { %415 = vadd.xlane.f32.xlu0 %v414_v18 }
 0x158   : > { %v419_v20 = vsel %vm335_vm1, %v418_v19, 0.0 }
 0x15b   : > { %420 = vadd.xlane.f32.xlu0 %v419_v20 }
 0x1e4   : > { %v416_v27 = vpop.xlane.xlu0 %415 }
 0x1e5   : > { %v417_v28 = vmul.f32 0.03125, %v416_v27 }
 0x1e7   : > { %v423_v30 = vmul.f32 %v417_v28, %v417_v28  ;;  %v428_v35 = vsub.f32 %v413_v17, %v417_v28 }
 0x1e8   : > { %v421_v29 = vpop.xlane.xlu0 %420 }
 0x1e9   : > { %v422_v31 = vmul.f32 0.03125, %v421_v29 }
 0x1eb   : > { %v424_v32 = vsub.f32 %v422_v31, %v423_v30 }
 0x1ed   : > { %v425_v33 = vmax.f32 %v424_v32, 0.0 }
 0x1ef   : > { %v426_v34 = vadd.f32 1e-12, %v425_v33 }
 0x1f1   : > { %746 = vrsqrt.f32 %v426_v34 }
 0x1fb   : > { %v747_v36 = vpop.eup %746 }
 0x1fc   : > { %v429_v38 = vmul.f32 %v747_v36, %v428_v35 }
 0x1fe   : > { %v437_v40 = vmul.f32 %v629_v37, %v429_v38 }
 0x200   : > { %v445_v41 = vadd.f32 %v630_v39, %v437_v40 }
 0x202   : > { %665 = vmatmul.mubr.msk.f32.vlgmr.msra.gmra.mrb[0].mxu1 %vm335_vm1, %v445_v41 }
 0x2d5   : > { %v526_v43 = vpop.f32.mrb[0].mxu1 }
 0x2d6   : > { %v527_v44 = vadd.f32 %v631_v42, %v526_v43  ;;  %v666_v45 = vpop.f32.mrb[1].mxu1 }
 0x2d8   : > { %530 = vst [vmem:[%s322_s11] sm:$0xff] %v527_v44 }
 0x2d9 PF: > { %p18_p9 = scmp.ge.s32.totalorder %s1015_s20, 4   ;;  %s1129_s24 = smov %s864_s25 }
 0x2da   : > { %s1130_s25 = smov %s868_s26  ;;  %s1131_s26 = smov %s1026_s8 }
 0x2db   : > { %s1132_s27 = smov %s1015_s20  ;;  %20 = sbr.rel (!%p18_p9) target bundleno = 4 (0x4), region = 96 }
 0x2e2   :  { %550 = vsyncpa [#allocation3], 1 }
 0x2e3   :  { %552 = vsyncpa [#allocation3 + $0x1], 1 }
 0x2e4   :  { %553 = vsyncpa [#allocation5], 1 }

</bundles_post_ra>
